<compile_context>
chip_gen: v7x
topology: tpu7x:2x2x1
jax: 0.10.0
libtpu: 0.0.40
codegen_flags: <defaults>
</compile_context>

<pallas_src>
import jax
import jax.numpy as jnp
from jax.experimental import pallas as pl
from jax.experimental.pallas import tpu as pltpu


def _d_get_logits_kernel(x_ref, w_ref, b_ref, o_ref):
    # x_ref: (TB, K) VMEM tile; w_ref: (K, 1) VMEM (resident across grid steps);
    # b_ref: (1, 1) SMEM scalar; o_ref: (TB, 1) f32.
    z = jnp.dot(x_ref[...], w_ref[...], preferred_element_type=jnp.float32)
    z = z + b_ref[0, 0]
    o_ref[...] = jax.nn.sigmoid(z)


def _round_up(a, m):
    return (a + m - 1) // m * m


def d_get_logits(h_code, conv_w, conv_b, *, tb_cap=256):
    """bcondition=False path: Sigmoid(Conv2d(C->1, k=4, s=4)(h_code)).view(-1).

    h_code: (B, C, 4, 4) NCHW; conv_w: (1, C, 4, 4); conv_b: (1,).
    Returns (B,) float32.
    """
    B, C, H, W = h_code.shape
    assert (H, W) == (4, 4), "outlogits expects a 4x4 spatial map"
    K = C * H * W
    dtype = h_code.dtype
    itemsize = jnp.dtype(dtype).itemsize

    # Row-major (C, H, W) flattening matches PyTorch .contiguous() layout.
    x = h_code.reshape(B, K)                       # keep native dtype (no f32 copy)
    w = conv_w.reshape(K, 1).astype(dtype)         # (K, 1), same flattening order
    b = conv_b.reshape(1, 1).astype(jnp.float32)   # SMEM scalar

    # Batch tile: multiple of 8 (sublane constraint), double-buffered footprint
    # kept under ~8 MiB so it fits the smallest scoped-VMEM default (v5e 16 MiB)
    # and leaves headroom on v7x (32 MiB scoped / 64 MiB physical).
    budget = 8 * 1024 * 1024
    tb_fit = max(8, (budget // (2 * K * itemsize)) // 8 * 8)
    TB = int(min(tb_cap, tb_fit, _round_up(B, 8)))
    Bp = _round_up(B, TB)
    if Bp != B:
        # Padded rows compute sigmoid(bias) and are sliced away below.
        x = jnp.pad(x, ((0, Bp - B), (0, 0)))

    cost = pl.CostEstimate(
        flops=2 * Bp * K,
        transcendentals=Bp,
        bytes_accessed=Bp * K * itemsize + K * itemsize + Bp * 4,
    )

    out = pl.pallas_call(
        _d_get_logits_kernel,
        out_shape=jax.ShapeDtypeStruct((Bp, 1), jnp.float32),
        grid_spec=pl.GridSpec(
            grid=(Bp // TB,),
            in_specs=[
                pl.BlockSpec((TB, K), lambda i: (i, 0)),            # x: pipelined batch tiles
                pl.BlockSpec((K, 1), lambda i: (0, 0)),             # w: resident across steps
                pl.BlockSpec(memory_space=pltpu.MemorySpace.SMEM),  # bias: SMEM scalar
            ],
            out_specs=pl.BlockSpec((TB, 1), lambda i: (i, 0)),
        ),
        compiler_params=pltpu.CompilerParams(
            dimension_semantics=("parallel",),
            vmem_limit_bytes=32 * 1024 * 1024,
        ),
        cost_estimate=cost,
    )(x, w, b)

    return out.reshape(-1)[:B]  # matches output.view(-1)


def _reference(h_code, conv_w, conv_b):
    B = h_code.shape[0]
    x = h_code.reshape(B, -1).astype(jnp.float32)
    w = conv_w.reshape(1, -1).astype(jnp.float32)
    b = conv_b.astype(jnp.float32)
    return jax.nn.sigmoid(x @ w.T + b).reshape(-1)


if __name__ == "__main__":
    # Small, module-consistent shapes: ndf=4 -> C = ndf*8 = 32, spatial 4x4, batch 2.
    ndf = 4
    B, C, H, W = 2, ndf * 8, 4, 4

    key = jax.random.PRNGKey(0)
    k_h, k_w, k_b, k_h2 = jax.random.split(key, 4)

    h_code = jax.random.normal(k_h, (B, C, H, W), dtype=jnp.float32)
    # Deterministic synthetic Conv2d(C, 1, kernel_size=4, stride=4) parameters.
    fan_in = C * 4 * 4
    bound = 1.0 / (fan_in ** 0.5)
    conv_w = jax.random.uniform(k_w, (1, C, 4, 4), minval=-bound, maxval=bound,
                                dtype=jnp.float32)
    conv_b = jax.random.uniform(k_b, (1,), minval=-bound, maxval=bound,
                                dtype=jnp.float32)

    out = jax.block_until_ready(d_get_logits(h_code, conv_w, conv_b))
    ref = _reference(h_code, conv_w, conv_b)
    assert out.shape == (B,)
    assert jnp.allclose(out, ref, atol=1e-5, rtol=1e-5)

    # Second case: non-multiple batch to exercise multi-tile grid + padding.
    B2 = 19
    h_code2 = jax.random.normal(k_h2, (B2, C, H, W), dtype=jnp.float32)
    out2 = jax.block_until_ready(d_get_logits(h_code2, conv_w, conv_b, tb_cap=8))
    ref2 = _reference(h_code2, conv_w, conv_b)
    assert out2.shape == (B2,)
    assert jnp.allclose(out2, ref2, atol=1e-5, rtol=1e-5)

    print("KERNEL_OK")
</pallas_src>

<mosaic_0001>
module attributes {stable_mosaic.version = 11 : i64} {
  func.func @_d_get_logits_kernel(%arg0: i32, %arg1: memref<8x512xf32, #tpu.memory_space<vmem>>, %arg2: memref<512x1xf32, #tpu.memory_space<vmem>>, %arg3: memref<1x1xf32, #tpu.memory_space<smem>>, %arg4: memref<8x1xf32, #tpu.memory_space<vmem>>) attributes {dimension_semantics = [#tpu.dimension_semantics<parallel>], iteration_bounds = array<i64: 1>, scalar_prefetch = 0 : i64, scratch_operands = 0 : i64, tpu.core_type = #tpu.core_type<tc>, window_params = [{transform_indices = @transform_0, window_bounds = array<i64: 8, 512>}, {pipeline_mode = #tpu.pipeline_mode<synchronous>, transform_indices = @transform_1, window_bounds = array<i64: 512, 1>}, {transform_indices = @transform_2, window_bounds = array<i64: 1, 1>}, {transform_indices = @transform_3, window_bounds = array<i64: 8, 1>}]} {
    %c0 = arith.constant 0 : index
    %c0_0 = arith.constant 0 : index
    %0 = vector.load %arg1[%c0, %c0_0] : memref<8x512xf32, #tpu.memory_space<vmem>>, vector<8x512xf32>
    %c0_1 = arith.constant 0 : index
    %c0_2 = arith.constant 0 : index
    %1 = vector.load %arg2[%c0_1, %c0_2] : memref<512x1xf32, #tpu.memory_space<vmem>>, vector<512x1xf32>
    %cst = arith.constant dense<0.000000e+00> : vector<8x1xf32>
    %2 = tpu.matmul %0, %1, %cst {dimension_numbers = #tpu.dot_dimension_numbers<[1], [0], [0], [1], [0, 0, 1, 1], [], []>} : vector<8x512xf32>, vector<512x1xf32>, vector<8x1xf32> -> vector<8x1xf32>
    %c0_3 = arith.constant 0 : index
    %c0_4 = arith.constant 0 : index
    %3 = memref.load %arg3[%c0_3, %c0_4] : memref<1x1xf32, #tpu.memory_space<smem>>
    %4 = vector.broadcast %3 : f32 to vector<8x1xf32>
    %5 = arith.addf %2, %4 : vector<8x1xf32>
    %6 = arith.negf %5 : vector<8x1xf32>
    %7 = math.exp %6 : vector<8x1xf32>
    %cst_5 = arith.constant 1.000000e+00 : f32
    %8 = vector.broadcast %cst_5 : f32 to vector<8x1xf32>
    %9 = arith.addf %8, %7 : vector<8x1xf32>
    %10 = arith.divf %8, %9 : vector<8x1xf32>
    %c0_6 = arith.constant 0 : index
    %c0_7 = arith.constant 0 : index
    %11 = vector.load %arg4[%c0_6, %c0_7] : memref<8x1xf32, #tpu.memory_space<vmem>>, vector<8x1xf32>
    tpu.vector_store %arg4[%c0_6, %c0_7], %10 {strides = array<i32>} : memref<8x1xf32, #tpu.memory_space<vmem>>, vector<8x1xf32>,
    return
  }
  func.func @transform_0(%arg0: i32) -> (i32, i32) {
    %c0_i32 = arith.constant 0 : i32
    %c0_i32_0 = arith.constant 0 : i32
    return %arg0, %c0_i32 : i32, i32
  }
  func.func @transform_1(%arg0: i32) -> (i32, i32) {
    %c0_i32 = arith.constant 0 : i32
    %c0_i32_0 = arith.constant 0 : i32
    %c0_i32_1 = arith.constant 0 : i32
    return %c0_i32, %c0_i32_0 : i32, i32
  }
  func.func @transform_2(%arg0: i32) -> (i32, i32) {
    %c0_i32 = arith.constant 0 : i32
    %c0_i32_0 = arith.constant 0 : i32
    %c0_i32_1 = arith.constant 0 : i32
    return %c0_i32, %c0_i32_0 : i32, i32
  }
  func.func @transform_3(%arg0: i32) -> (i32, i32) {
    %c0_i32 = arith.constant 0 : i32
    %c0_i32_0 = arith.constant 0 : i32
    return %arg0, %c0_i32 : i32, i32
  }
}

</mosaic_0001>

<bundles_post_ra>
// kernel: tpu_custom_call.1
= control target key start
LH: loop header
LB: loop body
LE: loop exit
PB: predicated region body
PF: predicated region fallthrough
CT: control target
= control target key end

     0   :  { %vm231_vm0 = vcmask 7168   ;;  %s606_s1 = inlined_call_operand.vmem [shape: f32[512,1], index: 1, kind: input, shape index: {}]   ;;  %s607_s0 = inlined_call_operand.vmem [shape: f32[8,512], index: 0, kind: input, shape index: {}]   ;;  %s608_s2 = inlined_call_operand.<no memory space> [shape: f32[1,1], index: 2, kind: input, shape index: {}]   ;;  %s609_s3 = inlined_call_operand.vmem [shape: f32[8,1], index: 3, kind: output, shape index: {}]  }
   0x1   :  { %v35_v0 = vld [vmem:[%s606_s1 + $0x80] sm:$0xff]  ;;  %v36_v1 = vld [vmem:[%s606_s1 + $0x88] sm:$0xff]  ;;  %v37_v11 = vld [vmem:[%s606_s1 + $0x90] sm:$0xff] }
   0x2   :  { %v19_v2 = vld [vmem:[%s606_s1] sm:$0xff]  ;;  %v308_v3 = vpack.c.bf16 %v36_v1, %v35_v0  ;;  %v20_v4 = vld [vmem:[%s606_s1 + $0x8] sm:$0xff]  ;;  %v38_v13 = vld [vmem:[%s606_s1 + $0x98] sm:$0xff] }
   0x3   :  { %v67_v5 = vld [vmem:[%s606_s1 + $0x180] sm:$0xff]  ;;  %v68_v6 = vld [vmem:[%s606_s1 + $0x188] sm:$0xff]  ;;  %v310_v7 = vpack.c.bf16 %v20_v4, %v19_v2  ;;  %v21_v14 = vld [vmem:[%s606_s1 + $0x10] sm:$0xff]  ;;  %v312_v16 = vpack.c.bf16 %v38_v13, %v37_v11 }
   0x4   :  { %v340_v8 = vpack.c.bf16 %v68_v6, %v67_v5  ;;  %v51_v9 = vld [vmem:[%s606_s1 + $0x100] sm:$0xff]  ;;  %v52_v10 = vld [vmem:[%s606_s1 + $0x108] sm:$0xff]  ;;  %309 = vmatprep.subr.bf16.mxu0 %v308_v3  ;;  %v22_v15 = vld [vmem:[%s606_s1 + $0x18] sm:$0xff] }
   0x5   :  { %v342_v12 = vpack.c.bf16 %v52_v10, %v51_v9  ;;  %311 = vmatpush3.bf16.msra.mxu0 %v310_v7  ;;  %v314_v17 = vpack.c.bf16 %v22_v15, %v21_v14  ;;  %v69_v18 = vld [vmem:[%s606_s1 + $0x190] sm:$0xff]  ;;  %v70_v19 = vld [vmem:[%s606_s1 + $0x198] sm:$0xff]  ;;  %v39_v23 = vld [vmem:[%s606_s1 + $0xa0] sm:$0xff] }
   0x6   :  { %341 = vmatprep.subr.bf16.mxu1 %v340_v8  ;;  %v53_v20 = vld [vmem:[%s606_s1 + $0x110] sm:$0xff]  ;;  %v344_v21 = vpack.c.bf16 %v70_v19, %v69_v18  ;;  %v54_v22 = vld [vmem:[%s606_s1 + $0x118] sm:$0xff]  ;;  %v40_v24 = vld [vmem:[%s606_s1 + $0xa8] sm:$0xff]  ;;  %313 = vmatprep.subr.bf16.mxu0 %v312_v16 }
   0x7   :  { %343 = vmatpush3.bf16.msra.mxu1 %v342_v12  ;;  %v346_v25 = vpack.c.bf16 %v54_v22, %v53_v20  ;;  %v316_v26 = vpack.c.bf16 %v40_v24, %v39_v23  ;;  %v23_v27 = vld [vmem:[%s606_s1 + $0x20] sm:$0xff]  ;;  %v24_v28 = vld [vmem:[%s606_s1 + $0x28] sm:$0xff]  ;;  %v41_v35 = vld [vmem:[%s606_s1 + $0xb0] sm:$0xff] }
   0x8   :  { %v71_v29 = vld [vmem:[%s606_s1 + $0x1a0] sm:$0xff]  ;;  %345 = vmatprep.subr.bf16.mxu1 %v344_v21  ;;  %v72_v30 = vld [vmem:[%s606_s1 + $0x1a8] sm:$0xff]  ;;  %v318_v33 = vpack.c.bf16 %v24_v28, %v23_v27  ;;  %v42_v36 = vld [vmem:[%s606_s1 + $0xb8] sm:$0xff] }
   0x9   :  { %v55_v31 = vld [vmem:[%s606_s1 + $0x120] sm:$0xff]  ;;  %v56_v32 = vld [vmem:[%s606_s1 + $0x128] sm:$0xff]  ;;  %315 = vmatpush3.bf16.msra.mxu0 %v314_v17  ;;  %v348_v34 = vpack.c.bf16 %v72_v30, %v71_v29  ;;  %v25_v37 = vld [vmem:[%s606_s1 + $0x30] sm:$0xff]  ;;  %v320_v39 = vpack.c.bf16 %v42_v36, %v41_v35 }
   0xa   :  { %317 = vmatprep.subr.bf16.mxu0 %v316_v26  ;;  %v350_v38 = vpack.c.bf16 %v56_v32, %v55_v31  ;;  %v26_v40 = vld [vmem:[%s606_s1 + $0x38] sm:$0xff]  ;;  %v73_v41 = vld [vmem:[%s606_s1 + $0x1b0] sm:$0xff]  ;;  %v43_v46 = vld [vmem:[%s606_s1 + $0xc0] sm:$0xff] }
   0xb   :  { %347 = vmatpush3.bf16.msra.mxu1 %v346_v25  ;;  %v74_v42 = vld [vmem:[%s606_s1 + $0x1b8] sm:$0xff]  ;;  %v57_v44 = vld [vmem:[%s606_s1 + $0x130] sm:$0xff]  ;;  %v44_v47 = vld [vmem:[%s606_s1 + $0xc8] sm:$0xff]  ;;  %v322_v48 = vpack.c.bf16 %v26_v40, %v25_v37  ;;  %v84_v37 = vstv %s608_s2 }
   0xc   :  { %349 = vmatprep.subr.bf16.mxu1 %v348_v34  ;;  %v352_v43 = vpack.c.bf16 %v74_v42, %v73_v41  ;;  %v58_v45 = vld [vmem:[%s606_s1 + $0x138] sm:$0xff]  ;;  %v75_v49 = vld [vmem:[%s606_s1 + $0x1c0] sm:$0xff]  ;;  %v76_v50 = vld [vmem:[%s606_s1 + $0x1c8] sm:$0xff]  ;;  %v324_v52 = vpack.c.bf16 %v44_v47, %v43_v46 }
   0xd   :  { %319 = vmatpush3.bf16.msra.mxu0 %v318_v33  ;;  %v354_v51 = vpack.c.bf16 %v58_v45, %v57_v44  ;;  %v27_v53 = vld [vmem:[%s606_s1 + $0x40] sm:$0xff]  ;;  %v28_v54 = vld [vmem:[%s606_s1 + $0x48] sm:$0xff]  ;;  %v356_v56 = vpack.c.bf16 %v76_v50, %v75_v49  ;;  %v45_v58 = vld [vmem:[%s606_s1 + $0xd0] sm:$0xff] }
   0xe   :  { %321 = vmatprep.subr.bf16.mxu0 %v320_v39  ;;  %v59_v55 = vld [vmem:[%s606_s1 + $0x140] sm:$0xff]  ;;  %v60_v57 = vld [vmem:[%s606_s1 + $0x148] sm:$0xff]  ;;  %v46_v59 = vld [vmem:[%s606_s1 + $0xd8] sm:$0xff]  ;;  %v326_v62 = vpack.c.bf16 %v28_v54, %v27_v53 }
   0xf   :  { %351 = vmatpush3.bf16.msra.mxu1 %v350_v38  ;;  %v77_v60 = vld [vmem:[%s606_s1 + $0x1d0] sm:$0xff]  ;;  %v78_v61 = vld [vmem:[%s606_s1 + $0x1d8] sm:$0xff]  ;;  %v358_v63 = vpack.c.bf16 %v60_v57, %v59_v55  ;;  %v328_v0 = vpack.c.bf16 %v46_v59, %v45_v58  ;;  %v47_v6 = vld [vmem:[%s606_s1 + $0xe0] sm:$0xff] }
  0x10   :  { %353 = vmatprep.subr.bf16.mxu1 %v352_v43  ;;  %v29_v1 = vld [vmem:[%s606_s1 + $0x50] sm:$0xff]  ;;  %v30_v2 = vld [vmem:[%s606_s1 + $0x58] sm:$0xff]  ;;  %v360_v4 = vpack.c.bf16 %v78_v61, %v77_v60  ;;  %v48_v7 = vld [vmem:[%s606_s1 + $0xe8] sm:$0xff] }
  0x11   :  { %323 = vmatpush3.bf16.msra.mxu0 %v322_v48  ;;  %v61_v3 = vld [vmem:[%s606_s1 + $0x150] sm:$0xff]  ;;  %v62_v5 = vld [vmem:[%s606_s1 + $0x158] sm:$0xff]  ;;  %v79_v8 = vld [vmem:[%s606_s1 + $0x1e0] sm:$0xff]  ;;  %v330_v10 = vpack.c.bf16 %v30_v2, %v29_v1  ;;  %v332_v14 = vpack.c.bf16 %v48_v7, %v47_v6 }
  0x12   :  { %325 = vmatprep.subr.bf16.mxu0 %v324_v52  ;;  %v80_v9 = vld [vmem:[%s606_s1 + $0x1e8] sm:$0xff]  ;;  %v31_v11 = vld [vmem:[%s606_s1 + $0x60] sm:$0xff]  ;;  %v362_v13 = vpack.c.bf16 %v62_v5, %v61_v3  ;;  %v49_v19 = vld [vmem:[%s606_s1 + $0xf0] sm:$0xff] }
  0x13   :  { %355 = vmatpush3.bf16.msra.mxu1 %v354_v51  ;;  %v32_v12 = vld [vmem:[%s606_s1 + $0x68] sm:$0xff]  ;;  %v63_v15 = vld [vmem:[%s606_s1 + $0x160] sm:$0xff]  ;;  %v364_v18 = vpack.c.bf16 %v80_v9, %v79_v8  ;;  %v50_v20 = vld [vmem:[%s606_s1 + $0xf8] sm:$0xff] }
  0x14   :  { %357 = vmatprep.subr.bf16.mxu1 %v356_v56  ;;  %v64_v16 = vld [vmem:[%s606_s1 + $0x168] sm:$0xff]  ;;  %v18_v21 = vld [vmem:[%s607_s0 + $0x18] sm:$0xff]  ;;  %v81_v22 = vld [vmem:[%s606_s1 + $0x1f0] sm:$0xff]  ;;  %v334_v24 = vpack.c.bf16 %v32_v12, %v31_v11  ;;  %v336_v26 = vpack.c.bf16 %v50_v20, %v49_v19 }
  0x15   :  { %327 = vmatpush3.bf16.msra.mxu0 %v326_v62  ;;  %v16_v17 = vld [vmem:[%s607_s0 + $0x8] sm:$0xff]  ;;  %v82_v23 = vld [vmem:[%s606_s1 + $0x1f8] sm:$0xff]  ;;  %219 = vmatprep.mubr.f32.mxu1 %v18_v21  ;;  %v366_v25 = vpack.c.bf16 %v64_v16, %v63_v15  ;;  %v33_v27 = vld [vmem:[%s606_s1 + $0x70] sm:$0xff] }
  0x16   :  { %329 = vmatprep.subr.bf16.mxu0 %v328_v0  ;;  %149 = vmatprep.mubr.f32.mxu0 %v16_v17  ;;  %v34_v28 = vld [vmem:[%s606_s1 + $0x78] sm:$0xff]  ;;  %v368_v29 = vpack.c.bf16 %v82_v23, %v81_v22  ;;  %v65_v30 = vld [vmem:[%s606_s1 + $0x170] sm:$0xff]  ;;  %v15_v34 = vld [vmem:[%s607_s0] sm:$0xff] }
  0x17   :  { %359 = vmatpush3.bf16.msra.mxu1 %v358_v63  ;;  %v66_v31 = vld [vmem:[%s606_s1 + $0x178] sm:$0xff]  ;;  %v338_v32 = vpack.c.bf16 %v34_v28, %v33_v27  ;;  %v17_v35 = vld [vmem:[%s607_s0 + $0x10] sm:$0xff] }
  0x18   :  { %361 = vmatprep.subr.bf16.mxu1 %v360_v4  ;;  %v370_v33 = vpack.c.bf16 %v66_v31, %v65_v30 }
  0x19   :  { %331 = vmatpush3.bf16.msra.mxu0 %v330_v10 }
  0x1a   :  { %333 = vmatprep.subr.bf16.mxu0 %v332_v14 }
  0x1b   :  { %363 = vmatpush3.bf16.msra.mxu1 %v362_v13 }
  0x1c   :  { %365 = vmatprep.subr.bf16.mxu1 %v364_v18 }
  0x1d   :  { %335 = vmatpush3.bf16.msra.mxu0 %v334_v24 }
  0x1e   :  { %337 = vmatprep.subr.bf16.mxu0 %v336_v26 }
  0x1f   :  { %367 = vmatpush3.bf16.msra.mxu1 %v366_v25 }
  0x20   :  { %369 = vmatprep.subr.bf16.mxu1 %v368_v29 }
  0x21   :  { %339 = vmatpush3.bf16.msra.mxu0 %v338_v32 }
  0x23   :  { %371 = vmatpush3.bf16.msra.mxu1 %v370_v33 }
  0x24   :  { %150 = vmatmul.mubr.f32.vlgmr.msra.gmra.mrb[0].mxu0 %v15_v34 }
  0x26   :  { %220 = vmatmul.mubr.f32.vlgmr.msra.gmra.mrb[0].mxu1 %v17_v35 }
  0xf7   :  { %v270_v36 = vpop.f32.mrb[0].mxu0 }
  0xf8   :  { %v271_v38 = vpop.f32.mrb[1].mxu0 }
  0xf9   :  { %v305_v39 = vpop.f32.mrb[0].mxu1  ;;  %v272_v40 = vadd.f32 %v271_v38, %v270_v36 }
  0xfa   :  { %v306_v41 = vpop.f32.mrb[1].mxu1 }
  0xfb   :  { %v307_v42 = vadd.f32 %v306_v41, %v305_v39  ;;  %v152_v43 = vadd.f32 %v272_v40, %v84_v37 }
  0xfd   :  { %v222_v44 = vadd.f32 %v307_v42, %v152_v43 }
  0xff   :  { %v237_v45 = vmul.f32 -1.442695, %v222_v44 }
 0x101   :  { %372 = vpow2.f32 %v237_v45 }
 0x10b   :  { %v373_v46 = vpop.eup %372 }
 0x10c   :  { %v228_v47 = vadd.f32 1.0, %v373_v46 }
 0x10e   :  { %374 = vrcp.f32 %v228_v47 }
 0x118   :  { %v375_v48 = vpop.eup %374 }
 0x119   :  { %232 = vst.msk [vmem:[%s609_s3] sm:$0xff] %vm231_vm0, %v375_v48 }

</bundles_post_ra>
